<compile_context>
chip_gen: v5e
topology: v5e:2x2
jax: 0.10.0
libtpu: 0.0.40
codegen_flags: <defaults>
</compile_context>

<pallas_src>
import math
from functools import partial, lru_cache

import numpy as np
import jax
import jax.numpy as jnp
from jax.experimental import pallas as pl
from jax.experimental.pallas import tpu as pltpu

_BN_EPS = 1e-5
_BN_SCALE = 1.0 / math.sqrt(1.0 + _BN_EPS)
_ACT_DTYPE = jnp.bfloat16


def _vmem_capacity_bytes():
    try:
        info = pltpu.get_tpu_info()
        cap = getattr(info, "vmem_capacity_bytes", None)
        if cap:
            return int(cap)
    except Exception:
        pass
    return 64 * 1024 * 1024


_VMEM_CAP = _vmem_capacity_bytes()
_BIG_VMEM = _VMEM_CAP >= 96 * 1024 * 1024          # v5e/v6e: 128 MiB; v7x: 64 MiB/TC
_VMEM_LIMIT = (64 if _BIG_VMEM else 40) * 1024 * 1024
_MM_M_FULL = 2048 if _BIG_VMEM else 1024
_MM_M_TILE = 1024 if _BIG_VMEM else 512
_MM_N_CAP = 512 if _BIG_VMEM else 256
_MM_K_CAP = 2048
_CONV_TM = 512
_EW_M_FULL = 4096
_EW_M_TILE = 2048


def _round_up(x, m):
    return ((x + m - 1) // m) * m


def _choose_dividing_tile(dim, cap, quantum):
    t = min(cap, (dim // quantum) * quantum)
    while t >= quantum:
        if dim % t == 0:
            return t
        t -= quantum
    return None


def _plan_dim(dim, full_cap, tile_cap, quantum):
    """Pick (padded_dim, tile): prefer a full-dim block, then an exactly-dividing
    tile (no pad/slice copies); fall back to padding only if neither exists."""
    if dim <= full_cap:
        return dim, dim
    t = _choose_dividing_tile(dim, tile_cap, quantum)
    if t is not None:
        return dim, t
    return _round_up(dim, tile_cap), tile_cap


# ---------------------------------------------------------------------------
# Fused matmul:  out = maybe_relu(x @ w + bias + residual), bf16 MXU / f32 acc
# ---------------------------------------------------------------------------
def _make_mm_kernel(relu, has_bias, has_residual):
    def kernel(*refs):
        x_ref, w_ref = refs[0], refs[1]
        idx = 2
        b_ref = r_ref = None
        if has_bias:
            b_ref = refs[idx]; idx += 1
        if has_residual:
            r_ref = refs[idx]; idx += 1
        o_ref, acc_ref = refs[idx], refs[idx + 1]

        @pl.when(pl.program_id(2) == 0)
        def _():
            acc_ref[...] = jnp.zeros_like(acc_ref)

        acc_ref[...] += jnp.dot(x_ref[...].astype(jnp.bfloat16),
                                w_ref[...].astype(jnp.bfloat16),
                                preferred_element_type=jnp.float32)

        @pl.when(pl.program_id(2) == pl.num_programs(2) - 1)
        def _():
            y = acc_ref[...]
            if has_bias:
                y = y + b_ref[...].astype(jnp.float32)
            if has_residual:
                y = y + r_ref[...].astype(jnp.float32)
            if relu:
                y = jnp.maximum(y, 0.0)
            o_ref[...] = y.astype(o_ref.dtype)

    return kernel


@partial(jax.jit, static_argnames=("relu",))
def matmul_fused(x, w, bias=None, residual=None, *, relu=False):
    M, K = x.shape
    K2, N = w.shape
    assert K == K2
    Mp, tm = _plan_dim(M, _MM_M_FULL, _MM_M_TILE, 8)
    Np, tn = _plan_dim(N, _MM_N_CAP, _MM_N_CAP, 128)
    Kp, tk = _plan_dim(K, _MM_K_CAP, _MM_K_CAP, 128)

    xp = x if (Mp == M and Kp == K) else jnp.pad(x, ((0, Mp - M), (0, Kp - K)))
    wp = w if (Kp == K and Np == N) else jnp.pad(w, ((0, Kp - K), (0, Np - N)))

    has_bias = bias is not None
    has_res = residual is not None
    mt, nt, kt = Mp // tm, Np // tn, Kp // tk

    # axis with the most tiles goes outermost (v7x megacore); K stays innermost.
    if mt >= nt:
        grid = (mt, nt, kt)
        xi = lambda i, j, k: (i, k)
        wi = lambda i, j, k: (k, j)
        vi = lambda i, j, k: (0, j)
        ri = lambda i, j, k: (i, j)
        oi = lambda i, j, k: (i, j)
    else:
        grid = (nt, mt, kt)
        xi = lambda j, i, k: (i, k)
        wi = lambda j, i, k: (k, j)
        vi = lambda j, i, k: (0, j)
        ri = lambda j, i, k: (i, j)
        oi = lambda j, i, k: (i, j)

    args = [xp, wp]
    in_specs = [pl.BlockSpec((tm, tk), xi), pl.BlockSpec((tk, tn), wi)]
    if has_bias:
        bp = bias.reshape(1, N).astype(jnp.float32)
        if Np != N:
            bp = jnp.pad(bp, ((0, 0), (0, Np - N)))
        args.append(bp)
        in_specs.append(pl.BlockSpec((1, tn), vi))
    if has_res:
        rp = residual if (Mp == M and Np == N) else jnp.pad(
            residual, ((0, Mp - M), (0, Np - N)))
        args.append(rp)
        in_specs.append(pl.BlockSpec((tm, tn), ri))

    out = pl.pallas_call(
        _make_mm_kernel(relu, has_bias, has_res),
        out_shape=jax.ShapeDtypeStruct((Mp, Np), _ACT_DTYPE),
        grid_spec=pltpu.PrefetchScalarGridSpec(
            num_scalar_prefetch=0,
            grid=grid,
            in_specs=in_specs,
            out_specs=pl.BlockSpec((tm, tn), oi),
            scratch_shapes=[pltpu.VMEM((tm, tn), jnp.float32)]),
        compiler_params=pltpu.CompilerParams(
            dimension_semantics=("parallel", "parallel", "arbitrary"),
            vmem_limit_bytes=_VMEM_LIMIT),
    )(*args)
    if Mp != M or Np != N:
        out = out[:M, :N]
    return out


# ---------------------------------------------------------------------------
# Implicit-im2col 3x3 / stride-1 / pad-1 conv:
# the padded activation is flattened to (rows, C) and kept resident in VMEM;
# each output tile accumulates 9 row-shifted matmuls (tap offset = kh*Wp + kw).
# ---------------------------------------------------------------------------
def _make_conv3x3_kernel(wp, tm, relu, has_bias):
    def kernel(x_ref, w_ref, *rest):
        if has_bias:
            b_ref, o_ref, acc_ref = rest
        else:
            o_ref, acc_ref = rest
        m0 = pl.multiple_of(pl.program_id(0) * tm, 8)
        first = True
        for kh in range(3):
            # Wp is a multiple of 8, so this dynamic sublane start stays 8-aligned.
            xw = x_ref[pl.ds(m0 + kh * wp, tm + 8), :]           # (tm+8, C) bf16
            for kw in range(3):
                p = jnp.dot(xw, w_ref[3 * kh + kw],
                            preferred_element_type=jnp.float32)  # (tm+8, OC) f32
                contrib = p[kw:kw + tm, :]                       # static row shift
                if first:
                    acc_ref[...] = contrib
                    first = False
                else:
                    acc_ref[...] += contrib
        y = acc_ref[...]
        if has_bias:
            y = y + b_ref[...].astype(jnp.float32)
        if relu:
            y = jnp.maximum(y, 0.0)
        o_ref[...] = y.astype(o_ref.dtype)
    return kernel


def _conv3x3_s1_single(img, w9, b, relu):
    """3x3 / stride 1 / pad 1 conv on one (H, W, C) image, implicit im2col."""
    H, W, C = img.shape
    OC = w9.shape[2]
    Wp = _round_up(W + 2, 8)               # W padding rounded so tap offsets stay aligned
    Mo = H * Wp                            # padded-width output rows (junk cols stripped later)
    tm = Mo if Mo <= _CONV_TM else _CONV_TM
    n_tiles = -(-Mo // tm)
    Mp = n_tiles * tm
    xp = jnp.pad(img.astype(_ACT_DTYPE), ((1, 1), (1, Wp - W - 1), (0, 0)))
    flat = xp.reshape(-1, C)
    need = Mp + 2 * Wp + 8                 # last tile reads tm+8 rows at offset +2*Wp
    if need > flat.shape[0]:
        flat = jnp.pad(flat, ((0, need - flat.shape[0]), (0, 0)))
    rows_in = flat.shape[0]

    has_bias = b is not None
    args = [flat, w9]
    in_specs = [pl.BlockSpec((rows_in, C), lambda i: (0, 0)),     # fully resident
                pl.BlockSpec((9, C, OC), lambda i: (0, 0, 0))]
    if has_bias:
        args.append(b.reshape(1, OC).astype(jnp.float32))
        in_specs.append(pl.BlockSpec((1, OC), lambda i: (0, 0)))

    out = pl.pallas_call(
        _make_conv3x3_kernel(Wp, tm, relu, has_bias),
        out_shape=jax.ShapeDtypeStruct((Mp, OC), _ACT_DTYPE),
        grid_spec=pltpu.PrefetchScalarGridSpec(
            num_scalar_prefetch=0,
            grid=(n_tiles,),
            in_specs=in_specs,
            out_specs=pl.BlockSpec((tm, OC), lambda i: (i, 0)),
            scratch_shapes=[pltpu.VMEM((tm, OC), jnp.float32)]),
        compiler_params=pltpu.CompilerParams(
            dimension_semantics=("parallel",),
            vmem_limit_bytes=_VMEM_LIMIT),
    )(*args)
    return out[:Mo].reshape(H, Wp, OC)[:, :W, :]


# ---------------------------------------------------------------------------
# conv2d dispatcher (BN already folded into weights/bias at build time)
# ---------------------------------------------------------------------------
@partial(jax.jit, static_argnames=("ksize", "stride", "padding", "relu"))
def conv2d(x, w, b=None, residual=None, *, ksize=(1, 1), stride=1, padding=0, relu=False):
    N, H, W, C = x.shape
    KH, KW = ksize

    if KH == 1 and KW == 1:
        OC = w.shape[1]
        # TODO(synk): stride-2 1x1 sampling still goes through an XLA strided slice.
        xs = x[:, ::stride, ::stride, :] if stride != 1 else x
        _, OH, OW, _ = xs.shape
        res = None if residual is None else residual.reshape(N * OH * OW, OC)
        y = matmul_fused(xs.reshape(N * OH * OW, C), w, b, res, relu=relu)
        return y.reshape(N, OH, OW, OC)

    OC = w.shape[2]
    if stride == 1:                         # implicit im2col path
        outs = [_conv3x3_s1_single(x[n], w, b, relu) for n in range(N)]
        return outs[0][None] if N == 1 else jnp.stack(outs, axis=0)

    # stride-2 3x3 (stem conv1_1 + first block of layer2/3/4): small explicit im2col
    OH = (H + 2 * padding - KH) // stride + 1
    OW = (W + 2 * padding - KW) // stride + 1
    xp = jnp.pad(x, ((0, 0), (padding, padding), (padding, padding), (0, 0)))
    cols = [xp[:, kh:kh + stride * (OH - 1) + 1:stride,
               kw:kw + stride * (OW - 1) + 1:stride, :]
            for kh in range(KH) for kw in range(KW)]
    patches = (jnp.stack(cols, axis=3).astype(_ACT_DTYPE)
               .reshape(N * OH * OW, KH * KW * C))
    y = matmul_fused(patches, w.reshape(KH * KW * C, OC), b, None, relu=relu)
    return y.reshape(N, OH, OW, OC)


# ---------------------------------------------------------------------------
# 3x3 / stride 2 / pad 1 max-pool: two separable Pallas passes
# ---------------------------------------------------------------------------
def _pool3_s2_dim0(xp):
    """3-tap / stride-2 max along axis 0: (2n+2, D1, C) -> (n, D1, C)."""
    R, D1, C = xp.shape
    n = (R - 2) // 2
    xr = xp[:2 * n + 2].reshape(n + 1, 2, D1, C)

    def kernel(x_ref, o_ref):
        v = x_ref[...]
        o_ref[...] = jnp.maximum(jnp.maximum(v[0:n, 0], v[0:n, 1]), v[1:n + 1, 0])

    return pl.pallas_call(
        kernel,
        out_shape=jax.ShapeDtypeStruct((n, D1, C), xp.dtype),
        grid_spec=pltpu.PrefetchScalarGridSpec(
            num_scalar_prefetch=0, grid=(1,),
            in_specs=[pl.BlockSpec((n + 1, 2, D1, C), lambda i: (0, 0, 0, 0))],
            out_specs=pl.BlockSpec((n, D1, C), lambda i: (0, 0, 0))),
        compiler_params=pltpu.CompilerParams(
            dimension_semantics=("arbitrary",),
            vmem_limit_bytes=_VMEM_LIMIT),
    )(xr)


@jax.jit
def maxpool_3x3_s2_p1(x):
    N, H, W, C = x.shape
    pad_val = float(jnp.finfo(x.dtype).min)
    outs = []
    for nidx in range(N):
        xp = jnp.pad(x[nidx], ((1, 1), (1, 1), (0, 0)), constant_values=pad_val)
        t = _pool3_s2_dim0(xp)                      # (OH, W+2, C)
        t = jnp.transpose(t, (1, 0, 2))             # (W+2, OH, C)
        o = _pool3_s2_dim0(t)                       # (OW, OH, C)
        outs.append(jnp.transpose(o, (1, 0, 2)))    # (OH, OW, C)
    return outs[0][None] if N == 1 else jnp.stack(outs, axis=0)


# ---------------------------------------------------------------------------
# N-ary elementwise add (final FPN feature sum)
# ---------------------------------------------------------------------------
def _make_addn_kernel(n, relu):
    def kernel(*refs):
        o_ref = refs[n]
        acc = refs[0][...].astype(jnp.float32)
        for r in refs[1:n]:
            acc = acc + r[...].astype(jnp.float32)
        if relu:
            acc = jnp.maximum(acc, 0.0)
        o_ref[...] = acc.astype(o_ref.dtype)
    return kernel


@partial(jax.jit, static_argnames=("relu",))
def pallas_add(*arrays, relu=False):
    shape = arrays[0].shape
    C = shape[-1]
    M = int(np.prod(shape[:-1]))
    Mp, tm = _plan_dim(M, _EW_M_FULL, _EW_M_TILE, 8)
    Cp, tc = _plan_dim(C, 512, 512, 128)
    flats = []
    for a in arrays:
        f = a.reshape(M, C)
        if Mp != M or Cp != C:
            f = jnp.pad(f, ((0, Mp - M), (0, Cp - C)))
        flats.append(f)
    n = len(arrays)
    out = pl.pallas_call(
        _make_addn_kernel(n, relu),
        out_shape=jax.ShapeDtypeStruct((Mp, Cp), _ACT_DTYPE),
        grid_spec=pltpu.PrefetchScalarGridSpec(
            num_scalar_prefetch=0,
            grid=(Mp // tm, Cp // tc),
            in_specs=[pl.BlockSpec((tm, tc), lambda i, j: (i, j)) for _ in range(n)],
            out_specs=pl.BlockSpec((tm, tc), lambda i, j: (i, j))),
        compiler_params=pltpu.CompilerParams(
            dimension_semantics=("parallel", "parallel"),
            vmem_limit_bytes=_VMEM_LIMIT),
    )(*flats)
    if Mp != M or Cp != C:
        out = out[:M, :C]
    return out.reshape(shape)


# ---------------------------------------------------------------------------
# Bilinear resize (PyTorch-compatible, both align_corners modes)
# ---------------------------------------------------------------------------
@lru_cache(maxsize=None)
def _bilinear_matrix(in_size, out_size, align_corners):
    A = np.zeros((out_size, in_size), np.float32)
    for i in range(out_size):
        if align_corners:
            src = i * (in_size - 1) / (out_size - 1) if out_size > 1 else 0.0
        else:
            src = (i + 0.5) * in_size / out_size - 0.5
            if src < 0.0:
                src = 0.0
        i0 = min(int(np.floor(src)), in_size - 1)
        i1 = min(i0 + 1, in_size - 1)
        w1 = src - i0
        A[i, i0] += 1.0 - w1
        A[i, i1] += w1
    return A


@partial(jax.jit, static_argnames=("out_hw", "align_corners"))
def bilinear_resize(x, *, out_hw, align_corners):
    """NHWC bilinear resize: one fused Pallas matmul per axis."""
    N, H, W, C = x.shape
    Ho, Wo = out_hw
    Ah = jnp.asarray(_bilinear_matrix(H, Ho, align_corners))   # (Ho, H)
    Aw = jnp.asarray(_bilinear_matrix(W, Wo, align_corners))   # (Wo, W)
    outs = []
    for n in range(N):
        t = matmul_fused(Ah, x[n].reshape(H, W * C))           # (Ho, W*C)
        t = t.reshape(Ho, W, C).transpose(1, 0, 2).reshape(W, Ho * C)
        o = matmul_fused(Aw, t)                                # (Wo, Ho*C)
        outs.append(o.reshape(Wo, Ho, C).transpose(1, 0, 2))   # (Ho, Wo, C)
    return outs[0][None] if N == 1 else jnp.stack(outs, axis=0)


# ---------------------------------------------------------------------------
# Parameters (deterministic synthetic init; BN scale folded; weights bf16)
# ---------------------------------------------------------------------------
def build_params(seed=0):
    rng = np.random.default_rng(seed)
    s = _BN_SCALE

    def conv_w(oc, ic, kh, kw, scale=1.0):
        fan = ic * kh * kw
        std = math.sqrt(2.0 / fan)
        w = (rng.standard_normal((oc, ic, kh, kw)) * std * scale).astype(np.float32)
        w = np.transpose(w, (2, 3, 1, 0))          # (KH, KW, IC, OC)
        if kh == 1 and kw == 1:
            w = w.reshape(ic, oc)                  # 1x1: (IC, OC)
        else:
            w = w.reshape(kh * kw, ic, oc)         # KxK: (KH*KW, IC, OC)
        return jnp.asarray(w).astype(jnp.bfloat16)

    def conv_b(oc, fan_in, scale=1.0):
        bound = 1.0 / math.sqrt(fan_in)
        return jnp.asarray((rng.uniform(-bound, bound, (oc,)) * scale).astype(np.float32))

    def bottleneck(inplanes, width, downsample):
        p = {"conv1": conv_w(width, inplanes, 1, 1, s),
             "conv2": conv_w(width, width, 3, 3, s),
             "conv3": conv_w(width * 4, width, 1, 1, s)}
        if downsample:
            p["down"] = conv_w(width * 4, inplanes, 1, 1, s)
        return p

    def layer(inplanes, width, blocks):
        ps = [bottleneck(inplanes, width, True)]
        for _ in range(blocks - 1):
            ps.append(bottleneck(width * 4, width, False))
        return ps

    params = {
        "stem": {"conv1_1": conv_w(64, 3, 3, 3),
                 "conv1_2": conv_w(64, 64, 3, 3, s),
                 "conv1_3": conv_w(128, 64, 3, 3, s * s)},   # bn1_3 and trailing bn1 folded
        "layer1": layer(128, 64, 3),
        "layer2": layer(256, 128, 4),
        "layer3": layer(512, 256, 23),
        "layer4": layer(1024, 512, 3),
        "f1_cr": {"w": conv_w(128, 256, 1, 1, s), "b": conv_b(128, 256, s)},
        "f2_cr": {"w": conv_w(256, 512, 1, 1, s), "b": conv_b(256, 512, s)},
        "f2_su1": {"w": conv_w(128, 256, 3, 3, s), "b": conv_b(128, 256 * 9, s)},
        "f3_cr": {"w": conv_w(512, 1024, 1, 1, s), "b": conv_b(512, 1024, s)},
        "f3_su1": {"w": conv_w(256, 512, 3, 3, s), "b": conv_b(256, 512 * 9, s)},
        "f3_su2": {"w": conv_w(128, 256, 3, 3, s), "b": conv_b(128, 256 * 9, s)},
        "f4_cr": {"w": conv_w(1024, 2048, 1, 1, s), "b": conv_b(1024, 2048, s)},
        "f4_su1": {"w": conv_w(512, 1024, 3, 3, s), "b": conv_b(512, 1024 * 9, s)},
        "f4_su2": {"w": conv_w(256, 512, 3, 3, s), "b": conv_b(256, 512 * 9, s)},
        "f4_su3": {"w": conv_w(128, 256, 3, 3, s), "b": conv_b(128, 256 * 9, s)},
        "fc_w1": conv_w(64, 128, 3, 3), "fc_b1": conv_b(64, 128 * 9),
        "fc_w2": conv_w(3, 64, 1, 1), "fc_b2": conv_b(3, 64),
    }
    return params


# ---------------------------------------------------------------------------
# Forward pass
# ---------------------------------------------------------------------------
def bottleneck_forward(x, p, stride):
    out = conv2d(x, p["conv1"], ksize=(1, 1), relu=True)
    out = conv2d(out, p["conv2"], ksize=(3, 3), stride=stride, padding=1, relu=True)
    if "down" in p:
        identity = conv2d(x, p["down"], ksize=(1, 1), stride=stride, relu=False)
    else:
        identity = x
    # conv3 + (folded BN) + residual add + ReLU fused into one matmul epilogue
    return conv2d(out, p["conv3"], None, identity, ksize=(1, 1), relu=True)


def layer_forward(x, layer_params, stride):
    x = bottleneck_forward(x, layer_params[0], stride)
    for p in layer_params[1:]:
        x = bottleneck_forward(x, p, 1)
    return x


def channel_reduction_forward(x, p):            # Conv1x1 + BN + ReLU
    return conv2d(x, p["w"], p["b"], ksize=(1, 1), relu=True)


def simple_upsample_forward(x, p, out_hw):      # Conv3x3 + BN + ReLU + bilinear (ac=False)
    x = conv2d(x, p["w"], p["b"], ksize=(3, 3), stride=1, padding=1, relu=True)
    return bilinear_resize(x, out_hw=out_hw, align_corners=False)


def plain_fpn_forward(x_nchw, params):
    x = jnp.transpose(x_nchw, (0, 2, 3, 1)).astype(_ACT_DTYPE)    # NCHW -> NHWC, bf16

    # ---- ResNetPyramids ----
    p = params["stem"]
    x = conv2d(x, p["conv1_1"], ksize=(3, 3), stride=2, padding=1, relu=True)
    x = conv2d(x, p["conv1_2"], ksize=(3, 3), stride=1, padding=1, relu=True)
    x = conv2d(x, p["conv1_3"], ksize=(3, 3), stride=1, padding=1, relu=True)
    x = maxpool_3x3_s2_p1(x)

    x1 = layer_forward(x, params["layer1"], stride=1)    # (N, 60, 80, 256)
    x2 = layer_forward(x1, params["layer2"], stride=2)   # (N, 30, 40, 512)
    x3 = layer_forward(x2, params["layer3"], stride=2)   # (N, 15, 20, 1024)
    x4 = layer_forward(x3, params["layer4"], stride=2)   # (N,  8, 10, 2048)

    # ---- FPN head ----
    z1 = channel_reduction_forward(x1, params["f1_cr"])

    z2 = channel_reduction_forward(x2, params["f2_cr"])
    z2 = simple_upsample_forward(z2, params["f2_su1"], (z2.shape[1] * 2, z2.shape[2] * 2))

    z3 = channel_reduction_forward(x3, params["f3_cr"])
    z3 = simple_upsample_forward(z3, params["f3_su1"], (z3.shape[1] * 2, z3.shape[2] * 2))
    z3 = simple_upsample_forward(z3, params["f3_su2"], (z3.shape[1] * 2, z3.shape[2] * 2))

    z4 = channel_reduction_forward(x4, params["f4_cr"])
    z4 = simple_upsample_forward(z4, params["f4_su1"], (15, 20))
    z4 = simple_upsample_forward(z4, params["f4_su2"], (z4.shape[1] * 2, z4.shape[2] * 2))
    z4 = simple_upsample_forward(z4, params["f4_su3"], (z4.shape[1] * 2, z4.shape[2] * 2))

    s = pallas_add(z1, z2, z3, z4)
    y = conv2d(s, params["fc_w1"], params["fc_b1"], ksize=(3, 3), stride=1, padding=1,
               relu=True)
    y = conv2d(y, params["fc_w2"], params["fc_b2"], ksize=(1, 1), relu=False)
    y = bilinear_resize(y, out_hw=(240, 320), align_corners=True)   # UpsamplingBilinear2d
    return jnp.transpose(y, (0, 3, 1, 2)).astype(jnp.float32)        # NHWC -> NCHW, f32


if __name__ == "__main__":
    # PlainFPN hard-codes the intermediate (15, 20) spatial size and the final
    # (240, 320) upsample, which forces a 240x320 input; keep batch=1.
    x = jax.random.normal(jax.random.PRNGKey(0), (1, 3, 240, 320), jnp.float32)
    params = build_params(seed=0)
    y = plain_fpn_forward(x, params)
    y = jax.block_until_ready(y)
    assert y.shape == (1, 3, 240, 320) and y.dtype == jnp.float32
    print("KERNEL_OK")
</pallas_src>

<mosaic_0001>
module attributes {stable_mosaic.version = 11 : i64} {
  func.func @kernel(%arg0: i32, %arg1: i32, %arg2: i32, %arg3: memref<480x27xbf16, #tpu.memory_space<vmem>>, %arg4: memref<27x64xbf16, #tpu.memory_space<vmem>>, %arg5: memref<480x64xbf16, #tpu.memory_space<vmem>>, %arg6: memref<480x64xf32, #tpu.memory_space<vmem>>) attributes {dimension_semantics = [#tpu.dimension_semantics<parallel>, #tpu.dimension_semantics<parallel>, #tpu.dimension_semantics<arbitrary>], iteration_bounds = array<i64: 40, 1, 1>, scalar_prefetch = 0 : i64, scratch_operands = 1 : i64, tpu.core_type = #tpu.core_type<tc>, window_params = [{transform_indices = @transform_0, window_bounds = array<i64: 480, 27>}, {transform_indices = @transform_1, window_bounds = array<i64: 27, 64>}, {transform_indices = @transform_2, window_bounds = array<i64: 480, 64>}]} {
    %c0_i32 = arith.constant 0 : i32
    %0 = arith.cmpi eq, %arg2, %c0_i32 : i32
    %1 = arith.extui %0 : i1 to i32
    %c0_i32_0 = arith.constant 0 : i32
    %2 = arith.cmpi ne, %1, %c0_i32_0 : i32
    scf.if %2 {
      %cst_10 = arith.constant 0.000000e+00 : f32
      %12 = vector.broadcast %cst_10 : f32 to vector<480x64xf32>
      %c0_11 = arith.constant 0 : index
      %c0_12 = arith.constant 0 : index
      %13 = vector.load %arg6[%c0_11, %c0_12] : memref<480x64xf32, #tpu.memory_space<vmem>>, vector<480x64xf32>
      tpu.vector_store %arg6[%c0_11, %c0_12], %12 {strides = array<i32>} : memref<480x64xf32, #tpu.memory_space<vmem>>, vector<480x64xf32>,
    } else {
    }
    %c0 = arith.constant 0 : index
    %c0_1 = arith.constant 0 : index
    %3 = vector.load %arg6[%c0, %c0_1] : memref<480x64xf32, #tpu.memory_space<vmem>>, vector<480x64xf32>
    %c0_2 = arith.constant 0 : index
    %c0_3 = arith.constant 0 : index
    %4 = vector.load %arg3[%c0_2, %c0_3] : memref<480x27xbf16, #tpu.memory_space<vmem>>, vector<480x27xbf16>
    %c0_4 = arith.constant 0 : index
    %c0_5 = arith.constant 0 : index
    %5 = vector.load %arg4[%c0_4, %c0_5] : memref<27x64xbf16, #tpu.memory_space<vmem>>, vector<27x64xbf16>
    %cst = arith.constant dense<0.000000e+00> : vector<480x64xf32>
    %6 = tpu.matmul %4, %5, %cst {dimension_numbers = #tpu.dot_dimension_numbers<[1], [0], [0], [1], [0, 0, 1, 1], [], []>} : vector<480x27xbf16>, vector<27x64xbf16>, vector<480x64xf32> -> vector<480x64xf32>
    %7 = arith.addf %3, %6 : vector<480x64xf32>
    %c0_6 = arith.constant 0 : index
    %c0_7 = arith.constant 0 : index
    %8 = vector.load %arg6[%c0_6, %c0_7] : memref<480x64xf32, #tpu.memory_space<vmem>>, vector<480x64xf32>
    tpu.vector_store %arg6[%c0_6, %c0_7], %7 {strides = array<i32>} : memref<480x64xf32, #tpu.memory_space<vmem>>, vector<480x64xf32>,
    %c0_i32_8 = arith.constant 0 : i32
    %9 = arith.cmpi eq, %arg2, %c0_i32_8 : i32
    %10 = arith.extui %9 : i1 to i32
    %c0_i32_9 = arith.constant 0 : i32
    %11 = arith.cmpi ne, %10, %c0_i32_9 : i32
    scf.if %11 {
      %c0_10 = arith.constant 0 : index
      %c0_11 = arith.constant 0 : index
      %12 = vector.load %arg6[%c0_10, %c0_11] : memref<480x64xf32, #tpu.memory_space<vmem>>, vector<480x64xf32>
      %cst_12 = arith.constant 0.000000e+00 : f32
      %13 = vector.broadcast %cst_12 : f32 to vector<480x64xf32>
      %14 = arith.maximumf %12, %13 : vector<480x64xf32>
      %15 = arith.truncf %14 : vector<480x64xf32> to vector<480x64xbf16>
      %c0_13 = arith.constant 0 : index
      %c0_14 = arith.constant 0 : index
      %16 = vector.load %arg5[%c0_13, %c0_14] : memref<480x64xbf16, #tpu.memory_space<vmem>>, vector<480x64xbf16>
      tpu.vector_store %arg5[%c0_13, %c0_14], %15 {strides = array<i32>} : memref<480x64xbf16, #tpu.memory_space<vmem>>, vector<480x64xbf16>,
    } else {
    }
    return
  }
  func.func @transform_0(%arg0: i32, %arg1: i32, %arg2: i32) -> (i32, i32) {
    %c0_i32 = arith.constant 0 : i32
    return %arg0, %arg2 : i32, i32
  }
  func.func @transform_1(%arg0: i32, %arg1: i32, %arg2: i32) -> (i32, i32) {
    %c0_i32 = arith.constant 0 : i32
    return %arg2, %arg1 : i32, i32
  }
  func.func @transform_2(%arg0: i32, %arg1: i32, %arg2: i32) -> (i32, i32) {
    %c0_i32 = arith.constant 0 : i32
    return %arg0, %arg1 : i32, i32
  }
}

</mosaic_0001>

<bundles_post_ra>
// kernel: matmul_fused.1
= control target key start
LH: loop header
LB: loop body
LE: loop exit
PB: predicated region body
PF: predicated region fallthrough
CT: control target
= control target key end

     0   :  { %s1563_s9 = smov 0   ;;  %s1565_s10 = smov 0   ;;  %s1991_s0 = inlined_call_operand.vmem [shape: bf16[19200,27], index: 0, kind: input, shape index: {}]   ;;  %s1992_s1 = inlined_call_operand.vmem [shape: bf16[27,64], index: 1, kind: input, shape index: {}]   ;;  %s1993_s2 = inlined_call_operand.vmem [shape: bf16[19200,64], index: 2, kind: output, shape index: {}]  }
   0x1   :  { %s1567_s11 = smov 0  }
   0x2 LB: > { %s31_s12 = sadd.s32 1, %s1540_s10  ;;  %p1295_p0 = scmp.ge.s32.totalorder %s1544_s11, 1  ;;  %s1544_s11 = sphi %s1567_s11, %s12_s11   ;;  %s1540_s10 = sphi %s1565_s10, %s1995_s10   ;;  %s1536_s9 = sphi %s1563_s9, %s1994_s9  }
   0x3   : > { %p33_p1 = scmp.ge.s32.totalorder %s31_s12, 40  ;;  %p155_p2 = scmp.lt.s32.totalorder %s1544_s11, 41 }
   0x5   : > { %s1997_s12 = smov (%p33_p1, %s31_s12), 0  ;;  %p156_p3 = pnand %p1295_p0, %p155_p2 }
   0x6   : > { %s191_s17 = smul.u32 (!%p156_p3), 60, %s1536_s9 }
   0x7   : > { %159 = sbr.rel (%p156_p3) target bundleno = 293 (0x125), region = 28 }
   0x8   : > { %p192_p4 = scmp.lt.s32.totalorder (!%p156_p3), %s191_s17, 2399 }
   0xc   : > { %v1424_v0 = vld [vmem:[%s1992_s1 + $0x8] sm:$0xf]  ;;  %v1489_v1 = vld [vmem:[%s1992_s1 + $0x8] sm:$0x30]  ;;  %vm660_vm0 = vcmask 1044480   ;;  %vm661_vm1 = vcmask 1045504  }
   0xd   : > { %v1425_v2 = vor.u32 %v1489_v1, %v1424_v0  ;;  %v1546_v3 = vmov 65535   ;;  %s1999_s17 = smov (!%p192_p4, %s191_s17), 2399  ;;  %v1488_v7 = vld [vmem:[%s1992_s1] sm:$0xff]  ;;  %vm569_vm2 = vcmask 220160   ;;  %vm223_vm3 = vcmask 523264  }
   0xe   : > { %v662_v4 = vsel %vm660_vm0, 4294967295, %v1546_v3  ;;  %s1296_s20 = sshll.u32 %s1999_s17, 2  ;;  %v1547_v32 = vmov 0.0   ;;  %vm1130_vm4 = vcmask 519168  }
   0xf   : > { %v663_v5 = vsel %vm661_vm1, %v662_v4, 0  ;;  %s1598_s23 = scalar_lea.vmem %s1991_s0, %s1296_s20  ;;  %224 = vst.msk [vmem:[#allocation2] sm:$0xff] %vm223_vm3, %v1547_v32  ;;  %s1774_s26 = scalar_lea.vmem %s1993_s2, %s1296_s20 }
  0x10   : > { %v665_v6 = vand.u32 %v1425_v2, %v663_v5  ;;  %v1458_v8 = vld [vmem:[%s1598_s23] sm:$0xff]  ;;  %v1459_v12 = vld [vmem:[%s1598_s23 + $0x8] sm:$0xff]  ;;  %v1460_v16 = vld [vmem:[%s1598_s23 + $0x10] sm:$0xff]  ;;  %225 = vst.msk [vmem:[#allocation2 + $0x8] sm:$0xff] %vm223_vm3, %v1547_v32 }
  0x11   : > { %v1466_v9 = vld [vmem:[%s1598_s23 + $0x40] sm:$0xff]  ;;  %v1467_v13 = vld [vmem:[%s1598_s23 + $0x48] sm:$0xff]  ;;  %v1468_v17 = vld [vmem:[%s1598_s23 + $0x50] sm:$0xff]  ;;  %226 = vst.msk [vmem:[#allocation2 + $0x10] sm:$0xff] %vm223_vm3, %v1547_v32 }
  0x12   : > { %673 = vmatpush.bf16.msra.mxu0 %v665_v6  ;;  %1490 = vmatpush.bf16.msra.mxu1 %v665_v6  ;;  %v1474_v10 = vld [vmem:[%s1598_s23 + $0x80] sm:$0xff]  ;;  %v1475_v14 = vld [vmem:[%s1598_s23 + $0x88] sm:$0xff]  ;;  %v1476_v18 = vld [vmem:[%s1598_s23 + $0x90] sm:$0xff]  ;;  %227 = vst.msk [vmem:[#allocation2 + $0x18] sm:$0xff] %vm223_vm3, %v1547_v32 }
  0x13   : > { %1491 = vmatpush.bf16.msra.mxu2 %v665_v6  ;;  %1492 = vmatpush.bf16.msra.mxu3 %v665_v6  ;;  %v1482_v11 = vld [vmem:[%s1598_s23 + $0xc0] sm:$0xff]  ;;  %v1483_v15 = vld [vmem:[%s1598_s23 + $0xc8] sm:$0xff]  ;;  %v1484_v19 = vld [vmem:[%s1598_s23 + $0xd0] sm:$0xff]  ;;  %228 = vst.msk [vmem:[#allocation2 + $0x20] sm:$0xff] %vm223_vm3, %v1547_v32 }
  0x14   : > { %v1461_v20 = vld [vmem:[%s1598_s23 + $0x18] sm:$0xff]  ;;  %v1462_v24 = vld [vmem:[%s1598_s23 + $0x20] sm:$0xff]  ;;  %v1463_v28 = vld [vmem:[%s1598_s23 + $0x28] sm:$0xff]  ;;  %229 = vst.msk [vmem:[#allocation2 + $0x28] sm:$0xff] %vm223_vm3, %v1547_v32 }
  0x15   : > { %v1469_v21 = vld [vmem:[%s1598_s23 + $0x58] sm:$0xff]  ;;  %v1470_v25 = vld [vmem:[%s1598_s23 + $0x60] sm:$0xff]  ;;  %v1471_v29 = vld [vmem:[%s1598_s23 + $0x68] sm:$0xff]  ;;  %230 = vst.msk [vmem:[#allocation2 + $0x30] sm:$0xff] %vm223_vm3, %v1547_v32 }
  0x16   : > { %674 = vmatpush.bf16.msra.mxu0 %v1488_v7  ;;  %1493 = vmatpush.bf16.msra.mxu1 %v1488_v7  ;;  %v1477_v22 = vld [vmem:[%s1598_s23 + $0x98] sm:$0xff]  ;;  %v1478_v26 = vld [vmem:[%s1598_s23 + $0xa0] sm:$0xff]  ;;  %v1479_v30 = vld [vmem:[%s1598_s23 + $0xa8] sm:$0xff]  ;;  %231 = vst.msk [vmem:[#allocation2 + $0x38] sm:$0xff] %vm223_vm3, %v1547_v32 }
  0x17   : > { %1494 = vmatpush.bf16.msra.mxu2 %v1488_v7  ;;  %1495 = vmatpush.bf16.msra.mxu3 %v1488_v7  ;;  %v1485_v23 = vld [vmem:[%s1598_s23 + $0xd8] sm:$0xff]  ;;  %v1486_v27 = vld [vmem:[%s1598_s23 + $0xe0] sm:$0xff]  ;;  %v1487_v31 = vld [vmem:[%s1598_s23 + $0xe8] sm:$0xff]  ;;  %232 = vst.msk [vmem:[#allocation2 + $0x40] sm:$0xff] %vm223_vm3, %v1547_v32 }
  0x18   : > { %233 = vst.msk [vmem:[#allocation2 + $0x48] sm:$0xff] %vm223_vm3, %v1547_v32  ;;  %v1464_v33 = vld [vmem:[%s1598_s23 + $0x30] sm:$0xff]  ;;  %v1465_v36 = vld [vmem:[%s1598_s23 + $0x38] sm:$0xff]  ;;  %v284_v39 = vld [vmem:[#allocation2] sm:$0xff] }
  0x19   : > { %1426 = vmatmul.msk.bf16.vlgmr.msra.gmra.mxu0 %vm569_vm2, %v1458_v8  ;;  %1434 = vmatmul.msk.bf16.vlgmr.msra.gmra.mxu1 %vm569_vm2, %v1466_v9  ;;  %v1472_v34 = vld [vmem:[%s1598_s23 + $0x70] sm:$0xff]  ;;  %234 = vst.msk [vmem:[#allocation2 + $0x50] sm:$0xff] %vm223_vm3, %v1547_v32  ;;  %v1473_v37 = vld [vmem:[%s1598_s23 + $0x78] sm:$0xff]  ;;  %v285_v52 = vld [vmem:[#allocation2 + $0x8] sm:$0xff] }
  0x1a   : > { %1442 = vmatmul.msk.bf16.vlgmr.msra.gmra.mxu2 %vm569_vm2, %v1474_v10  ;;  %1450 = vmatmul.msk.bf16.vlgmr.msra.gmra.mxu3 %vm569_vm2, %v1482_v11  ;;  %v1480_v35 = vld [vmem:[%s1598_s23 + $0xb0] sm:$0xff]  ;;  %235 = vst.msk [vmem:[#allocation2 + $0x58] sm:$0xff] %vm223_vm3, %v1547_v32  ;;  %v1481_v38 = vld [vmem:[%s1598_s23 + $0xb8] sm:$0xff] }
  0x1b   : > { %236 = vst.msk [vmem:[#allocation2 + $0x60] sm:$0xff] %vm223_vm3, %v1547_v32  ;;  %v286_v61 = vld [vmem:[#allocation2 + $0x10] sm:$0xff]  ;;  %v287_v5 = vld [vmem:[#allocation2 + $0x18] sm:$0xff] }
  0x1c   : > { %237 = vst.msk [vmem:[#allocation2 + $0x68] sm:$0xff] %vm223_vm3, %v1547_v32 }
  0x1d   : > { %238 = vst.msk [vmem:[#allocation2 + $0x70] sm:$0xff] %vm223_vm3, %v1547_v32 }
  0x1e   : > { %239 = vst.msk [vmem:[#allocation2 + $0x78] sm:$0xff] %vm223_vm3, %v1547_v32 }
  0x1f   : > { %240 = vst.msk [vmem:[#allocation2 + $0x80] sm:$0xff] %vm223_vm3, %v1547_v32 }
  0x20   : > { %241 = vst.msk [vmem:[#allocation2 + $0x88] sm:$0xff] %vm223_vm3, %v1547_v32 }
  0x21   : > { %242 = vst.msk [vmem:[#allocation2 + $0x90] sm:$0xff] %vm223_vm3, %v1547_v32 }
  0x22   : > { %243 = vst.msk [vmem:[#allocation2 + $0x98] sm:$0xff] %vm223_vm3, %v1547_v32 }
  0x23   : > { %244 = vst.msk [vmem:[#allocation2 + $0xa0] sm:$0xff] %vm223_vm3, %v1547_v32 }
  0x24   : > { %245 = vst.msk [vmem:[#allocation2 + $0xa8] sm:$0xff] %vm223_vm3, %v1547_v32 }
  0x25   : > { %246 = vst.msk [vmem:[#allocation2 + $0xb0] sm:$0xff] %vm223_vm3, %v1547_v32 }
  0x26   : > { %247 = vst.msk [vmem:[#allocation2 + $0xb8] sm:$0xff] %vm223_vm3, %v1547_v32  ;;  %v300_v49 = vld [vmem:[#allocation2 + $0x80] sm:$0xff] }
  0x27   : > { %248 = vst.msk [vmem:[#allocation2 + $0xc0] sm:$0xff] %vm223_vm3, %v1547_v32  ;;  %v301_v54 = vld [vmem:[#allocation2 + $0x88] sm:$0xff] }
  0x28   : > { %249 = vst.msk [vmem:[#allocation2 + $0xc8] sm:$0xff] %vm223_vm3, %v1547_v32  ;;  %v302_v0 = vld [vmem:[#allocation2 + $0x90] sm:$0xff] }
  0x29   : > { %1427 = vmatmul.msk.bf16.gmra.mxu0 %vm569_vm2, %v1459_v12  ;;  %1435 = vmatmul.msk.bf16.gmra.mxu1 %vm569_vm2, %v1467_v13  ;;  %250 = vst.msk [vmem:[#allocation2 + $0xd0] sm:$0xff] %vm223_vm3, %v1547_v32  ;;  %v303_v6 = vld [vmem:[#allocation2 + $0x98] sm:$0xff] }
  0x2a   : > { %1443 = vmatmul.msk.bf16.gmra.mxu2 %vm569_vm2, %v1475_v14  ;;  %1451 = vmatmul.msk.bf16.gmra.mxu3 %vm569_vm2, %v1483_v15  ;;  %251 = vst.msk [vmem:[#allocation2 + $0xd8] sm:$0xff] %vm223_vm3, %v1547_v32 }
  0x2b   : > { %252 = vst.msk [vmem:[#allocation2 + $0xe0] sm:$0xff] %vm223_vm3, %v1547_v32 }
  0x2c   : > { %253 = vst.msk [vmem:[#allocation2 + $0xe8] sm:$0xff] %vm223_vm3, %v1547_v32 }
  0x2d   : > { %254 = vst.msk [vmem:[#allocation2 + $0xf0] sm:$0xff] %vm223_vm3, %v1547_v32 }
  0x2e   : > { %255 = vst.msk [vmem:[#allocation2 + $0xf8] sm:$0xff] %vm223_vm3, %v1547_v32 }
  0x2f   : > { %256 = vst.msk [vmem:[#allocation2 + $0x100] sm:$0xff] %vm223_vm3, %v1547_v32 }
  0x30   : > { %257 = vst.msk [vmem:[#allocation2 + $0x108] sm:$0xff] %vm223_vm3, %v1547_v32 }
  0x31   : > { %258 = vst.msk [vmem:[#allocation2 + $0x110] sm:$0xff] %vm223_vm3, %v1547_v32 }
  0x32   : > { %259 = vst.msk [vmem:[#allocation2 + $0x118] sm:$0xff] %vm223_vm3, %v1547_v32 }
  0x33   : > { %260 = vst.msk [vmem:[#allocation2 + $0x120] sm:$0xff] %vm223_vm3, %v1547_v32 }
  0x34   : > { %261 = vst.msk [vmem:[#allocation2 + $0x128] sm:$0xff] %vm223_vm3, %v1547_v32 }
  0x35   : > { %262 = vst.msk [vmem:[#allocation2 + $0x130] sm:$0xff] %vm223_vm3, %v1547_v32 }
  0x36   : > { %263 = vst.msk [vmem:[#allocation2 + $0x138] sm:$0xff] %vm223_vm3, %v1547_v32  ;;  %v316_v51 = vld [vmem:[#allocation2 + $0x100] sm:$0xff] }
  0x37   : > { %264 = vst.msk [vmem:[#allocation2 + $0x140] sm:$0xff] %vm223_vm3, %v1547_v32  ;;  %v317_v57 = vld [vmem:[#allocation2 + $0x108] sm:$0xff] }
  0x38   : > { %265 = vst.msk [vmem:[#allocation2 + $0x148] sm:$0xff] %vm223_vm3, %v1547_v32  ;;  %v318_v4 = vld [vmem:[#allocation2 + $0x110] sm:$0xff] }
  0x39   : > { %1428 = vmatmul.msk.bf16.gmra.mxu0 %vm569_vm2, %v1460_v16  ;;  %1436 = vmatmul.msk.bf16.gmra.mxu1 %vm569_vm2, %v1468_v17  ;;  %266 = vst.msk [vmem:[#allocation2 + $0x150] sm:$0xff] %vm223_vm3, %v1547_v32 }
  0x3a   : > { %1444 = vmatmul.msk.bf16.gmra.mxu2 %vm569_vm2, %v1476_v18  ;;  %1452 = vmatmul.msk.bf16.gmra.mxu3 %vm569_vm2, %v1484_v19  ;;  %267 = vst.msk [vmem:[#allocation2 + $0x158] sm:$0xff] %vm223_vm3, %v1547_v32 }
  0x3b   : > { %268 = vst.msk [vmem:[#allocation2 + $0x160] sm:$0xff] %vm223_vm3, %v1547_v32 }
  0x3c   : > { %269 = vst.msk [vmem:[#allocation2 + $0x168] sm:$0xff] %vm223_vm3, %v1547_v32 }
  0x3d   : > { %270 = vst.msk [vmem:[#allocation2 + $0x170] sm:$0xff] %vm223_vm3, %v1547_v32 }
  0x3e   : > { %271 = vst.msk [vmem:[#allocation2 + $0x178] sm:$0xff] %vm223_vm3, %v1547_v32 }
  0x3f   : > { %272 = vst.msk [vmem:[#allocation2 + $0x180] sm:$0xff] %vm223_vm3, %v1547_v32 }
  0x40   : > { %273 = vst.msk [vmem:[#allocation2 + $0x188] sm:$0xff] %vm223_vm3, %v1547_v32 }
  0x41   : > { %274 = vst.msk [vmem:[#allocation2 + $0x190] sm:$0xff] %vm223_vm3, %v1547_v32 }
  0x42   : > { %275 = vst.msk [vmem:[#allocation2 + $0x198] sm:$0xff] %vm223_vm3, %v1547_v32 }
  0x43   : > { %276 = vst.msk [vmem:[#allocation2 + $0x1a0] sm:$0xff] %vm223_vm3, %v1547_v32 }
  0x44   : > { %277 = vst.msk [vmem:[#allocation2 + $0x1a8] sm:$0xff] %vm223_vm3, %v1547_v32 }
  0x45   : > { %278 = vst.msk [vmem:[#allocation2 + $0x1b0] sm:$0xff] %vm223_vm3, %v1547_v32 }
  0x46   : > { %279 = vst.msk [vmem:[#allocation2 + $0x1b8] sm:$0xff] %vm223_vm3, %v1547_v32  ;;  %v332_v7 = vld [vmem:[#allocation2 + $0x180] sm:$0xff] }
  0x47   : > { %280 = vst.msk [vmem:[#allocation2 + $0x1c0] sm:$0xff] %vm223_vm3, %v1547_v32  ;;  %v333_v9 = vld [vmem:[#allocation2 + $0x188] sm:$0xff] }
  0x48   : > { %281 = vst.msk [vmem:[#allocation2 + $0x1c8] sm:$0xff] %vm223_vm3, %v1547_v32 }
  0x49   : > { %1429 = vmatmul.msk.bf16.gmra.mxu0 %vm569_vm2, %v1461_v20  ;;  %1437 = vmatmul.msk.bf16.gmra.mxu1 %vm569_vm2, %v1469_v21  ;;  %282 = vst.msk [vmem:[#allocation2 + $0x1d0] sm:$0xff] %vm223_vm3, %v1547_v32 }
  0x4a   : > { %1445 = vmatmul.msk.bf16.gmra.mxu2 %vm569_vm2, %v1477_v22  ;;  %1453 = vmatmul.msk.bf16.gmra.mxu3 %vm569_vm2, %v1485_v23  ;;  %283 = vst.msk [vmem:[#allocation2 + $0x1d8] sm:$0xff] %vm223_vm3, %v1547_v32 }
  0x59   : > { %1430 = vmatmul.msk.bf16.gmra.mxu0 %vm569_vm2, %v1462_v24  ;;  %1438 = vmatmul.msk.bf16.gmra.mxu1 %vm569_vm2, %v1470_v25 }
  0x5a   : > { %1446 = vmatmul.msk.bf16.gmra.mxu2 %vm569_vm2, %v1478_v26  ;;  %1454 = vmatmul.msk.bf16.gmra.mxu3 %vm569_vm2, %v1486_v27 }
  0x69   : > { %1431 = vmatmul.msk.bf16.gmra.mxu0 %vm569_vm2, %v1463_v28  ;;  %1439 = vmatmul.msk.bf16.gmra.mxu1 %vm569_vm2, %v1471_v29 }
  0x6a   : > { %1447 = vmatmul.msk.bf16.gmra.mxu2 %vm569_vm2, %v1479_v30  ;;  %1455 = vmatmul.msk.bf16.gmra.mxu3 %vm569_vm2, %v1487_v31 }
  0x79   : > { %1432 = vmatmul.msk.bf16.gmra.mxu0 %vm569_vm2, %v1464_v33  ;;  %1440 = vmatmul.msk.bf16.gmra.mxu1 %vm569_vm2, %v1472_v34 }
  0x7a   : > { %1448 = vmatmul.msk.bf16.gmra.mxu2 %vm569_vm2, %v1480_v35 }
  0x89   : > { %1433 = vmatmul.msk.bf16.gmra.mxu0 %vm569_vm2, %v1465_v36  ;;  %1441 = vmatmul.msk.bf16.gmra.mxu1 %vm569_vm2, %v1473_v37 }
  0x8a   : > { %1449 = vmatmul.msk.bf16.gmra.mxu2 %vm569_vm2, %v1481_v38 }
  0x96   : > { %v676_v40 = vpop.f32.mrf.mxu0  ;;  %v716_v41 = vpop.f32.mrf.mxu1 }
  0x97   : > { %v826_v42 = vadd.f32 %v676_v40, %v284_v39  ;;  %v842_v53 = vadd.f32 %v716_v41, %v300_v49 }
  0x99   : > { %887 = vst.msk [vmem:[#allocation2] sm:$0xff] %vm223_vm3, %v826_v42 }
  0x9a   : > { %903 = vst.msk [vmem:[#allocation2 + $0x80] sm:$0xff] %vm223_vm3, %v842_v53 }
  0x9d   : > { %v756_v43 = vpop.f32.mrf.mxu2  ;;  %v796_v46 = vpop.f32.mrf.mxu3 }
  0x9e   : > { %v678_v44 = vpop.f32.mrf.mxu0  ;;  %v718_v45 = vpop.f32.mrf.mxu1  ;;  %v858_v56 = vadd.f32 %v756_v43, %v316_v51  ;;  %v874_v15 = vadd.f32 %v796_v46, %v332_v7  ;;  %v334_v7 = vld [vmem:[#allocation2 + $0x190] sm:$0xff] }
  0x9f   : > { %v827_v60 = vadd.f32 %v678_v44, %v285_v52  ;;  %v843_v63 = vadd.f32 %v718_v45, %v301_v54  ;;  %v319_v45 = vld [vmem:[#allocation2 + $0x118] sm:$0xff]  ;;  %v288_v52 = vld [vmem:[#allocation2 + $0x20] sm:$0xff] }
  0xa0   : > { %v950_v47 = vld [vmem:[#allocation2] sm:$0xff]  ;;  %919 = vst.msk [vmem:[#allocation2 + $0x100] sm:$0xff] %vm223_vm3, %v858_v56 }
  0xa1   : > { %v1010_v48 = vmax.f32 %v950_v47, 0.0  ;;  %888 = vst.msk [vmem:[#allocation2 + $0x8] sm:$0xff] %vm223_vm3, %v827_v60  ;;  %v966_v17 = vld [vmem:[#allocation2 + $0x80] sm:$0xff] }
  0xa2   : > { %904 = vst.msk [vmem:[#allocation2 + $0x88] sm:$0xff] %vm223_vm3, %v843_v63  ;;  %v1026_v19 = vmax.f32 %v966_v17, 0.0  ;;  %v304_v56 = vld [vmem:[#allocation2 + $0xa0] sm:$0xff]  ;;  %v335_v17 = vld [vmem:[#allocation2 + $0x198] sm:$0xff] }
  0xa3   : > { %v1070_v50 = vpack.c.bf16 %v1010_v48, %v1010_v48  ;;  %935 = vst.msk [vmem:[#allocation2 + $0x180] sm:$0xff] %vm223_vm3, %v874_v15 }
  0xa4   : > { %v1086_v23 = vpack.c.bf16 %v1026_v19, %v1026_v19 }
  0xa5   : > { %1131 = vst.msk [vmem:[%s1774_s26] sm:$0xf] %vm1130_vm4, %v1070_v50  ;;  %v758_v55 = vpop.f32.mrf.mxu2  ;;  %v798_v62 = vpop.f32.mrf.mxu3 }
  0xa6   : > { %v681_v58 = vpop.f32.mrf.mxu0  ;;  %v721_v59 = vpop.f32.mrf.mxu1  ;;  %v859_v1 = vadd.f32 %v758_v55, %v317_v57  ;;  %v875_v18 = vadd.f32 %v798_v62, %v333_v9  ;;  %1147 = vst.msk [vmem:[%s1774_s26 + $0x40] sm:$0xf] %vm1130_vm4, %v1086_v23 }
  0xa7   : > { %v828_v2 = vadd.f32 %v681_v58, %v286_v61  ;;  %v844_v3 = vadd.f32 %v721_v59, %v302_v0  ;;  %v982_v20 = vld [vmem:[#allocation2 + $0x100] sm:$0xff] }
  0xa8   : > { %920 = vst.msk [vmem:[#allocation2 + $0x108] sm:$0xff] %vm223_vm3, %v859_v1  ;;  %v1042_v21 = vmax.f32 %v982_v20, 0.0  ;;  %v951_v22 = vld [vmem:[#allocation2 + $0x8] sm:$0xff]  ;;  %v320_v59 = vld [vmem:[#allocation2 + $0x120] sm:$0xff] }
  0xa9   : > { %889 = vst.msk [vmem:[#allocation2 + $0x10] sm:$0xff] %vm223_vm3, %v828_v2  ;;  %v1011_v24 = vmax.f32 %v951_v22, 0.0  ;;  %v967_v25 = vld [vmem:[#allocation2 + $0x88] sm:$0xff] }
  0xaa   : > { %905 = vst.msk [vmem:[#allocation2 + $0x90] sm:$0xff] %vm223_vm3, %v844_v3  ;;  %v1102_v26 = vpack.c.bf16 %v1042_v21, %v1042_v21  ;;  %v1027_v27 = vmax.f32 %v967_v25, 0.0  ;;  %v998_v51 = vld [vmem:[#allocation2 + $0x180] sm:$0xff]  ;;  %v289_v1 = vld [vmem:[#allocation2 + $0x28] sm:$0xff] }
  0xab   : > { %936 = vst.msk [vmem:[#allocation2 + $0x188] sm:$0xff] %vm223_vm3, %v875_v18  ;;  %v1071_v29 = vpack.c.bf16 %v1011_v24, %v1011_v24  ;;  %v1058_v55 = vmax.f32 %v998_v51, 0.0 }
  0xac   : > { %1163 = vst.msk [vmem:[%s1774_s26 + $0x80] sm:$0xf] %vm1130_vm4, %v1102_v26  ;;  %v1087_v33 = vpack.c.bf16 %v1027_v27, %v1027_v27 }
  0xad   : > { %v761_v8 = vpop.f32.mrf.mxu2  ;;  %v1797_v16 = vpop.f32.mrf.mxu3  ;;  %1132 = vst.msk [vmem:[%s1774_s26 + $0x4] sm:$0xf] %vm1130_vm4, %v1071_v29  ;;  %v1118_v61 = vpack.c.bf16 %v1058_v55, %v1058_v55 }
  0xae   : > { %v860_v10 = vadd.f32 %v761_v8, %v318_v4  ;;  %v683_v11 = vpop.f32.mrf.mxu0  ;;  %v723_v12 = vpop.f32.mrf.mxu1  ;;  %1148 = vst.msk [vmem:[%s1774_s26 + $0x44] sm:$0xf] %vm1130_vm4, %v1087_v33  ;;  %v322_v33 = vld [vmem:[#allocation2 + $0x130] sm:$0xff] }
  0xaf   : > { %v829_v13 = vadd.f32 %v683_v11, %v287_v5  ;;  %v845_v14 = vadd.f32 %v723_v12, %v303_v6  ;;  %v983_v28 = vld [vmem:[#allocation2 + $0x108] sm:$0xff]  ;;  %1179 = vst.msk [vmem:[%s1774_s26 + $0xc0] sm:$0xf] %vm1130_vm4, %v1118_v61  ;;  %v876_v12 = vadd.f32 %v1797_v16, %v334_v7  ;;  %v292_v7 = vld [vmem:[#allocation2 + $0x40] sm:$0xff] }
  0xb0   : > { %921 = vst.msk [vmem:[#allocation2 + $0x110] sm:$0xff] %vm223_vm3, %v860_v10  ;;  %v1043_v30 = vmax.f32 %v983_v28, 0.0  ;;  %v952_v31 = vld [vmem:[#allocation2 + $0x10] sm:$0xff]  ;;  %v305_v5 = vld [vmem:[#allocation2 + $0xa8] sm:$0xff] }
  0xb1   : > { %890 = vst.msk [vmem:[#allocation2 + $0x18] sm:$0xff] %vm223_vm3, %v829_v13  ;;  %v1012_v34 = vmax.f32 %v952_v31, 0.0  ;;  %v968_v35 = vld [vmem:[#allocation2 + $0x90] sm:$0xff]  ;;  %v321_v11 = vld [vmem:[#allocation2 + $0x128] sm:$0xff] }
  0xb2   : > { %906 = vst.msk [vmem:[#allocation2 + $0x98] sm:$0xff] %vm223_vm3, %v845_v14  ;;  %v1103_v38 = vpack.c.bf16 %v1043_v30, %v1043_v30  ;;  %v1028_v39 = vmax.f32 %v968_v35, 0.0  ;;  %v999_v57 = vld [vmem:[#allocation2 + $0x188] sm:$0xff]  ;;  %v290_v13 = vld [vmem:[#allocation2 + $0x30] sm:$0xff] }
  0xb3   : > { %v1072_v42 = vpack.c.bf16 %v1012_v34, %v1012_v34  ;;  %v1059_v60 = vmax.f32 %v999_v57, 0.0  ;;  %v306_v14 = vld [vmem:[#allocation2 + $0xb0] sm:$0xff]  ;;  %937 = vst.msk [vmem:[#allocation2 + $0x190] sm:$0xff] %vm223_vm3, %v876_v12 }
  0xb4   : > { %1164 = vst.msk [vmem:[%s1774_s26 + $0x84] sm:$0xf] %vm1130_vm4, %v1103_v38  ;;  %v1088_v46 = vpack.c.bf16 %v1028_v39, %v1028_v39 }
  0xb5   : > { %v763_v32 = vpop.f32.mrf.mxu2  ;;  %v1810_v41 = vpop.f32.mrf.mxu3  ;;  %1133 = vst.msk [vmem:[%s1774_s26 + $0x8] sm:$0xf] %vm1130_vm4, %v1072_v42  ;;  %v1119_v6 = vpack.c.bf16 %v1059_v60, %v1059_v60 }
  0xb6   : > { %v686_v36 = vpop.f32.mrf.mxu0  ;;  %v726_v37 = vpop.f32.mrf.mxu1  ;;  %1149 = vst.msk [vmem:[%s1774_s26 + $0x48] sm:$0xf] %vm1130_vm4, %v1088_v46  ;;  %v861_v54 = vadd.f32 %v763_v32, %v319_v45  ;;  %v877_v25 = vadd.f32 %v1810_v41, %v335_v17 }
  0xb7   : > { %v984_v40 = vld [vmem:[#allocation2 + $0x110] sm:$0xff]  ;;  %v830_v62 = vadd.f32 %v686_v36, %v288_v52  ;;  %v846_v0 = vadd.f32 %v726_v37, %v304_v56  ;;  %1180 = vst.msk [vmem:[%s1774_s26 + $0xc4] sm:$0xf] %vm1130_vm4, %v1119_v6  ;;  %v291_v52 = vld [vmem:[#allocation2 + $0x38] sm:$0xff] }
  0xb8   : > { %v1044_v43 = vmax.f32 %v984_v40, 0.0  ;;  %v953_v44 = vld [vmem:[#allocation2 + $0x18] sm:$0xff]  ;;  %922 = vst.msk [vmem:[#allocation2 + $0x118] sm:$0xff] %vm223_vm3, %v861_v54 }
  0xb9   : > { %v1013_v47 = vmax.f32 %v953_v44, 0.0  ;;  %v969_v48 = vld [vmem:[#allocation2 + $0x98] sm:$0xff]  ;;  %891 = vst.msk [vmem:[#allocation2 + $0x20] sm:$0xff] %vm223_vm3, %v830_v62 }
  0xba   : > { %v1104_v49 = vpack.c.bf16 %v1044_v43, %v1044_v43  ;;  %v1029_v50 = vmax.f32 %v969_v48, 0.0  ;;  %907 = vst.msk [vmem:[#allocation2 + $0xa0] sm:$0xff] %vm223_vm3, %v846_v0  ;;  %v1000_v42 = vld [vmem:[#allocation2 + $0x190] sm:$0xff]  ;;  %v323_v62 = vld [vmem:[#allocation2 + $0x138] sm:$0xff] }
  0xbb   : > { %v1073_v53 = vpack.c.bf16 %v1013_v47, %v1013_v47  ;;  %938 = vst.msk [vmem:[#allocation2 + $0x198] sm:$0xff] %vm223_vm3, %v877_v25  ;;  %v1060_v48 = vmax.f32 %v1000_v42, 0.0 }
  0xbc   : > { %1165 = vst.msk [vmem:[%s1774_s26 + $0x88] sm:$0xf] %vm1130_vm4, %v1104_v49  ;;  %v1089_v58 = vpack.c.bf16 %v1029_v50, %v1029_v50 }
  0xbd   : > { %1134 = vst.msk [vmem:[%s1774_s26 + $0xc] sm:$0xf] %vm1130_vm4, %v1073_v53  ;;  %v766_v63 = vpop.f32.mrf.mxu2  ;;  %v1830_v9 = vpop.f32.mrf.mxu3  ;;  %v1120_v53 = vpack.c.bf16 %v1060_v48, %v1060_v48 }
  0xbe   : > { %1150 = vst.msk [vmem:[%s1774_s26 + $0x4c] sm:$0xf] %vm1130_vm4, %v1089_v58  ;;  %v688_v2 = vpop.f32.mrf.mxu0  ;;  %v728_v3 = vpop.f32.mrf.mxu1  ;;  %v862_v4 = vadd.f32 %v766_v63, %v320_v59  ;;  %v307_v58 = vld [vmem:[#allocation2 + $0xb8] sm:$0xff] }
  0xbf   : > { %v831_v8 = vadd.f32 %v688_v2, %v289_v1  ;;  %v847_v10 = vadd.f32 %v728_v3, %v305_v5  ;;  %v985_v18 = vld [vmem:[#allocation2 + $0x118] sm:$0xff]  ;;  %1181 = vst.msk [vmem:[%s1774_s26 + $0xc8] sm:$0xf] %vm1130_vm4, %v1120_v53  ;;  %v336_v1 = vld [vmem:[#allocation2 + $0x1a0] sm:$0xff] }
  0xc0   : > { %923 = vst.msk [vmem:[#allocation2 + $0x120] sm:$0xff] %vm223_vm3, %v862_v4  ;;  %v1045_v22 = vmax.f32 %v985_v18, 0.0  ;;  %v954_v24 = vld [vmem:[#allocation2 + $0x20] sm:$0xff]  ;;  %v878_v12 = vadd.f32 %v1830_v9, %v336_v1  ;;  %v293_v9 = vld [vmem:[#allocation2 + $0x48] sm:$0xff] }
  0xc1   : > { %892 = vst.msk [vmem:[#allocation2 + $0x28] sm:$0xff] %vm223_vm3, %v831_v8  ;;  %v1014_v27 = vmax.f32 %v954_v24, 0.0  ;;  %v970_v28 = vld [vmem:[#allocation2 + $0xa0] sm:$0xff] }
  0xc2   : > { %908 = vst.msk [vmem:[#allocation2 + $0xa8] sm:$0xff] %vm223_vm3, %v847_v10  ;;  %v1105_v26 = vpack.c.bf16 %v1045_v22, %v1045_v22  ;;  %v1030_v29 = vmax.f32 %v970_v28, 0.0  ;;  %v1001_v60 = vld [vmem:[#allocation2 + $0x198] sm:$0xff]  ;;  %v309_v22 = vld [vmem:[#allocation2 + $0xc8] sm:$0xff] }
  0xc3   : > { %v1074_v31 = vpack.c.bf16 %v1014_v27, %v1014_v27  ;;  %v1061_v0 = vmax.f32 %v1001_v60, 0.0  ;;  %939 = vst.msk [vmem:[#allocation2 + $0x1a0] sm:$0xff] %vm223_vm3, %v878_v12 }
  0xc4   : > { %1166 = vst.msk [vmem:[%s1774_s26 + $0x8c] sm:$0xf] %vm1130_vm4, %v1105_v26  ;;  %v1090_v35 = vpack.c.bf16 %v1030_v29, %v1030_v29 }
  0xc5   : > { %v768_v15 = vpop.f32.mrf.mxu2  ;;  %v1846_v34 = vpop.f32.mrf.mxu3  ;;  %1135 = vst.msk [vmem:[%s1774_s26 + $0x10] sm:$0xf] %vm1130_vm4, %v1074_v31  ;;  %v1121_v5 = vpack.c.bf16 %v1061_v0, %v1061_v0 }
  0xc6   : > { %v863_v19 = vadd.f32 %v768_v15, %v321_v11  ;;  %v691_v20 = vpop.f32.mrf.mxu0  ;;  %v731_v21 = vpop.f32.mrf.mxu1  ;;  %1151 = vst.msk [vmem:[%s1774_s26 + $0x50] sm:$0xf] %vm1130_vm4, %v1090_v35  ;;  %v337_v15 = vld [vmem:[#allocation2 + $0x1a8] sm:$0xff] }
  0xc7   : > { %v832_v23 = vadd.f32 %v691_v20, %v290_v13  ;;  %v848_v16 = vadd.f32 %v731_v21, %v306_v14  ;;  %v986_v30 = vld [vmem:[#allocation2 + $0x120] sm:$0xff]  ;;  %1182 = vst.msk [vmem:[%s1774_s26 + $0xcc] sm:$0xf] %vm1130_vm4, %v1121_v5  ;;  %v879_v21 = vadd.f32 %v1846_v34, %v337_v15  ;;  %v295_v15 = vld [vmem:[#allocation2 + $0x58] sm:$0xff] }
  0xc8   : > { %924 = vst.msk [vmem:[#allocation2 + $0x128] sm:$0xff] %vm223_vm3, %v863_v19  ;;  %v1046_v32 = vmax.f32 %v986_v30, 0.0  ;;  %v955_v36 = vld [vmem:[#allocation2 + $0x28] sm:$0xff]  ;;  %v308_v13 = vld [vmem:[#allocation2 + $0xc0] sm:$0xff] }
  0xc9   : > { %893 = vst.msk [vmem:[#allocation2 + $0x30] sm:$0xff] %vm223_vm3, %v832_v23  ;;  %v1015_v38 = vmax.f32 %v955_v36, 0.0  ;;  %v971_v39 = vld [vmem:[#allocation2 + $0xa8] sm:$0xff]  ;;  %v324_v20 = vld [vmem:[#allocation2 + $0x140] sm:$0xff] }
  0xca   : > { %909 = vst.msk [vmem:[#allocation2 + $0xb0] sm:$0xff] %vm223_vm3, %v848_v16  ;;  %v1106_v37 = vpack.c.bf16 %v1046_v32, %v1046_v32  ;;  %v1031_v41 = vmax.f32 %v971_v39, 0.0  ;;  %v338_v16 = vld [vmem:[#allocation2 + $0x1b0] sm:$0xff] }
  0xcb   : > { %v1075_v46 = vpack.c.bf16 %v1015_v38, %v1015_v38  ;;  %940 = vst.msk [vmem:[#allocation2 + $0x1a8] sm:$0xff] %vm223_vm3, %v879_v21  ;;  %v1002_v38 = vld [vmem:[#allocation2 + $0x1a0] sm:$0xff]  ;;  %v311_v21 = vld [vmem:[#allocation2 + $0xd8] sm:$0xff] }
  0xcc   : > { %1167 = vst.msk [vmem:[%s1774_s26 + $0x90] sm:$0xf] %vm1130_vm4, %v1106_v37  ;;  %v1091_v49 = vpack.c.bf16 %v1031_v41, %v1031_v41  ;;  %v325_v41 = vld [vmem:[#allocation2 + $0x148] sm:$0xff] }
  0xcd   : > { %v771_v40 = vpop.f32.mrf.mxu2  ;;  %1136 = vst.msk [vmem:[%s1774_s26 + $0x14] sm:$0xf] %vm1130_vm4, %v1075_v46  ;;  %v811_v4 = vpop.f32.mrf.mxu3 }
  0xce   : > { %v864_v43 = vadd.f32 %v771_v40, %v322_v33  ;;  %v693_v44 = vpop.f32.mrf.mxu0  ;;  %v733_v45 = vpop.f32.mrf.mxu1  ;;  %1152 = vst.msk [vmem:[%s1774_s26 + $0x54] sm:$0xf] %vm1130_vm4, %v1091_v49  ;;  %v880_v33 = vadd.f32 %v811_v4, %v338_v16  ;;  %v1062_v40 = vmax.f32 %v1002_v38, 0.0 }
  0xcf   : > { %v987_v47 = vld [vmem:[#allocation2 + $0x128] sm:$0xff]  ;;  %v833_v61 = vadd.f32 %v693_v44, %v291_v52  ;;  %v849_v2 = vadd.f32 %v733_v45, %v307_v58 }
  0xd0   : > { %v1047_v50 = vmax.f32 %v987_v47, 0.0  ;;  %v956_v51 = vld [vmem:[#allocation2 + $0x30] sm:$0xff]  ;;  %925 = vst.msk [vmem:[#allocation2 + $0x130] sm:$0xff] %vm223_vm3, %v864_v43  ;;  %v1122_v44 = vpack.c.bf16 %v1062_v40, %v1062_v40 }
  0xd1   : > { %v1016_v54 = vmax.f32 %v956_v51, 0.0  ;;  %v972_v55 = vld [vmem:[#allocation2 + $0xb0] sm:$0xff]  ;;  %894 = vst.msk [vmem:[#allocation2 + $0x38] sm:$0xff] %vm223_vm3, %v833_v61 }
  0xd2   : > { %v1107_v56 = vpack.c.bf16 %v1047_v50, %v1047_v50  ;;  %v1032_v57 = vmax.f32 %v972_v55, 0.0  ;;  %910 = vst.msk [vmem:[#allocation2 + $0xb8] sm:$0xff] %vm223_vm3, %v849_v2  ;;  %v1003_v49 = vld [vmem:[#allocation2 + $0x1a8] sm:$0xff]  ;;  %v310_v2 = vld [vmem:[#allocation2 + $0xd0] sm:$0xff] }
  0xd3   : > { %v1076_v59 = vpack.c.bf16 %v1016_v54, %v1016_v54  ;;  %941 = vst.msk [vmem:[#allocation2 + $0x1b0] sm:$0xff] %vm223_vm3, %v880_v33  ;;  %v1063_v55 = vmax.f32 %v1003_v49, 0.0 }
  0xd4   : > { %1168 = vst.msk [vmem:[%s1774_s26 + $0x94] sm:$0xf] %vm1130_vm4, %v1107_v56  ;;  %v1092_v63 = vpack.c.bf16 %v1032_v57, %v1032_v57 }
  0xd5   : > { %1137 = vst.msk [vmem:[%s1774_s26 + $0x18] sm:$0xf] %vm1130_vm4, %v1076_v59  ;;  %v773_v3 = vpop.f32.mrf.mxu2  ;;  %v1881_v31 = vpop.f32.mrf.mxu3  ;;  %v294_v59 = vld [vmem:[#allocation2 + $0x50] sm:$0xff]  ;;  %v1123_v60 = vpack.c.bf16 %v1063_v55, %v1063_v55 }
  0xd6   : > { %1153 = vst.msk [vmem:[%s1774_s26 + $0x58] sm:$0xf] %vm1130_vm4, %v1092_v63  ;;  %v865_v6 = vadd.f32 %v773_v3, %v323_v62  ;;  %v696_v8 = vpop.f32.mrf.mxu0  ;;  %v736_v10 = vpop.f32.mrf.mxu1 }
  0xd7   : > { %v988_v11 = vld [vmem:[#allocation2 + $0x130] sm:$0xff]  ;;  %v834_v17 = vadd.f32 %v696_v8, %v292_v7  ;;  %v850_v19 = vadd.f32 %v736_v10, %v308_v13  ;;  %1183 = vst.msk [vmem:[%s1774_s26 + $0xd0] sm:$0xf] %vm1130_vm4, %v1122_v44  ;;  %v339_v10 = vld [vmem:[#allocation2 + $0x1b8] sm:$0xff] }
  0xd8   : > { %v1048_v14 = vmax.f32 %v988_v11, 0.0  ;;  %926 = vst.msk [vmem:[#allocation2 + $0x138] sm:$0xff] %vm223_vm3, %v865_v6  ;;  %v957_v24 = vld [vmem:[#allocation2 + $0x38] sm:$0xff]  ;;  %v326_v6 = vld [vmem:[#allocation2 + $0x150] sm:$0xff] }
  0xd9   : > { %895 = vst.msk [vmem:[#allocation2 + $0x40] sm:$0xff] %vm223_vm3, %v834_v17  ;;  %v1017_v28 = vmax.f32 %v957_v24, 0.0  ;;  %v973_v32 = vld [vmem:[#allocation2 + $0xb8] sm:$0xff] }
  0xda   : > { %v1108_v18 = vpack.c.bf16 %v1048_v14, %v1048_v14  ;;  %911 = vst.msk [vmem:[#allocation2 + $0xc0] sm:$0xff] %vm223_vm3, %v850_v19  ;;  %v1033_v35 = vmax.f32 %v973_v32, 0.0  ;;  %v1004_v4 = vld [vmem:[#allocation2 + $0x1b0] sm:$0xff] }
  0xdb   : > { %v1077_v34 = vpack.c.bf16 %v1017_v28, %v1017_v28  ;;  %1184 = vst.msk [vmem:[%s1774_s26 + $0xd4] sm:$0xf] %vm1130_vm4, %v1123_v60  ;;  %v1064_v8 = vmax.f32 %v1004_v4, 0.0  ;;  %v296_v28 = vld [vmem:[#allocation2 + $0x60] sm:$0xff] }
  0xdc   : > { %1169 = vst.msk [vmem:[%s1774_s26 + $0x98] sm:$0xf] %vm1130_vm4, %v1108_v18  ;;  %v1093_v39 = vpack.c.bf16 %v1033_v35, %v1033_v35 }
  0xdd   : > { %v776_v23 = vpop.f32.mrf.mxu2  ;;  %1138 = vst.msk [vmem:[%s1774_s26 + $0x1c] sm:$0xf] %vm1130_vm4, %v1077_v34  ;;  %v816_v63 = vpop.f32.mrf.mxu3  ;;  %v1124_v13 = vpack.c.bf16 %v1064_v8, %v1064_v8 }
  0xde   : > { %v866_v25 = vadd.f32 %v776_v23, %v324_v20  ;;  %v698_v26 = vpop.f32.mrf.mxu0  ;;  %v738_v27 = vpop.f32.mrf.mxu1  ;;  %1154 = vst.msk [vmem:[%s1774_s26 + $0x5c] sm:$0xf] %vm1130_vm4, %v1093_v39  ;;  %v881_v20 = vadd.f32 %v1881_v31, %v339_v10  ;;  %v341_v31 = vld [vmem:[#allocation2 + $0x1c8] sm:$0xff] }
  0xdf   : > { %v835_v29 = vadd.f32 %v698_v26, %v293_v9  ;;  %v851_v30 = vadd.f32 %v738_v27, %v309_v22  ;;  %v989_v36 = vld [vmem:[#allocation2 + $0x138] sm:$0xff]  ;;  %1185 = vst.msk [vmem:[%s1774_s26 + $0xd8] sm:$0xf] %vm1130_vm4, %v1124_v13  ;;  %v340_v22 = vld [vmem:[#allocation2 + $0x1c0] sm:$0xff]  ;;  %v313_v10 = vld [vmem:[#allocation2 + $0xe8] sm:$0xff] }
  0xe0   : > { %927 = vst.msk [vmem:[#allocation2 + $0x140] sm:$0xff] %vm223_vm3, %v866_v25  ;;  %v1049_v37 = vmax.f32 %v989_v36, 0.0  ;;  %v958_v43 = vld [vmem:[#allocation2 + $0x40] sm:$0xff]  ;;  %v327_v25 = vld [vmem:[#allocation2 + $0x158] sm:$0xff]  ;;  %v882_v26 = vadd.f32 %v816_v63, %v340_v22  ;;  %v298_v22 = vld [vmem:[#allocation2 + $0x70] sm:$0xff] }
  0xe1   : > { %896 = vst.msk [vmem:[#allocation2 + $0x48] sm:$0xff] %vm223_vm3, %v835_v29  ;;  %v1018_v45 = vmax.f32 %v958_v43, 0.0  ;;  %v974_v46 = vld [vmem:[#allocation2 + $0xc0] sm:$0xff] }
  0xe2   : > { %912 = vst.msk [vmem:[#allocation2 + $0xc8] sm:$0xff] %vm223_vm3, %v851_v30  ;;  %v1109_v42 = vpack.c.bf16 %v1049_v37, %v1049_v37  ;;  %v1034_v48 = vmax.f32 %v974_v46, 0.0  ;;  %v312_v29 = vld [vmem:[#allocation2 + $0xe0] sm:$0xff] }
  0xe3   : > { %v1078_v53 = vpack.c.bf16 %v1018_v45, %v1018_v45  ;;  %942 = vst.msk [vmem:[#allocation2 + $0x1b8] sm:$0xff] %vm223_vm3, %v881_v20 }
  0xe4   : > { %1170 = vst.msk [vmem:[%s1774_s26 + $0x9c] sm:$0xf] %vm1130_vm4, %v1109_v42  ;;  %v1094_v56 = vpack.c.bf16 %v1034_v48, %v1034_v48  ;;  %v328_v48 = vld [vmem:[#allocation2 + $0x160] sm:$0xff] }
  0xe5   : > { %v778_v47 = vpop.f32.mrf.mxu2  ;;  %1139 = vst.msk [vmem:[%s1774_s26 + $0x20] sm:$0xf] %vm1130_vm4, %v1078_v53  ;;  %v818_v27 = vpop.f32.mrf.mxu3 }
  0xe6   : > { %v867_v50 = vadd.f32 %v778_v47, %v325_v41  ;;  %v701_v51 = vpop.f32.mrf.mxu0  ;;  %v741_v52 = vpop.f32.mrf.mxu1  ;;  %1155 = vst.msk [vmem:[%s1774_s26 + $0x60] sm:$0xf] %vm1130_vm4, %v1094_v56  ;;  %v883_v40 = vadd.f32 %v818_v27, %v341_v31 }
  0xe7   : > { %v990_v54 = vld [vmem:[#allocation2 + $0x140] sm:$0xff]  ;;  %v836_v5 = vadd.f32 %v701_v51, %v294_v59  ;;  %v852_v11 = vadd.f32 %v741_v52, %v310_v2  ;;  %943 = vst.msk [vmem:[#allocation2 + $0x1c0] sm:$0xff] %vm223_vm3, %v882_v26  ;;  %v314_v26 = vld [vmem:[#allocation2 + $0xf0] sm:$0xff] }
  0xe8   : > { %v1050_v57 = vmax.f32 %v990_v54, 0.0  ;;  %v959_v58 = vld [vmem:[#allocation2 + $0x48] sm:$0xff]  ;;  %928 = vst.msk [vmem:[#allocation2 + $0x148] sm:$0xff] %vm223_vm3, %v867_v50 }
  0xe9   : > { %v1019_v61 = vmax.f32 %v959_v58, 0.0  ;;  %v975_v62 = vld [vmem:[#allocation2 + $0xc8] sm:$0xff]  ;;  %897 = vst.msk [vmem:[#allocation2 + $0x50] sm:$0xff] %vm223_vm3, %v836_v5 }
  0xea   : > { %v1110_v0 = vpack.c.bf16 %v1050_v57, %v1050_v57  ;;  %v1035_v1 = vmax.f32 %v975_v62, 0.0  ;;  %913 = vst.msk [vmem:[#allocation2 + $0xd0] sm:$0xff] %vm223_vm3, %v852_v11  ;;  %v1005_v45 = vld [vmem:[#allocation2 + $0x1b8] sm:$0xff] }
  0xeb   : > { %v1079_v3 = vpack.c.bf16 %v1019_v61, %v1019_v61  ;;  %v1065_v47 = vmax.f32 %v1005_v45, 0.0  ;;  %944 = vst.msk [vmem:[#allocation2 + $0x1c8] sm:$0xff] %vm223_vm3, %v883_v40 }
  0xec   : > { %1171 = vst.msk [vmem:[%s1774_s26 + $0xa0] sm:$0xf] %vm1130_vm4, %v1110_v0  ;;  %v1095_v7 = vpack.c.bf16 %v1035_v1, %v1035_v1 }
  0xed   : > { %1140 = vst.msk [vmem:[%s1774_s26 + $0x24] sm:$0xf] %vm1130_vm4, %v1079_v3  ;;  %v781_v12 = vpop.f32.mrf.mxu2  ;;  %v1125_v51 = vpack.c.bf16 %v1065_v47, %v1065_v47  ;;  %v821_v55 = vpop.f32.mrf.mxu3  ;;  %v297_v3 = vld [vmem:[#allocation2 + $0x68] sm:$0xff] }
  0xee   : > { %1156 = vst.msk [vmem:[%s1774_s26 + $0x64] sm:$0xf] %vm1130_vm4, %v1095_v7  ;;  %v868_v14 = vadd.f32 %v781_v12, %v326_v6  ;;  %v703_v17 = vpop.f32.mrf.mxu0  ;;  %v743_v18 = vpop.f32.mrf.mxu1  ;;  %v1006_v57 = vld [vmem:[#allocation2 + $0x1c0] sm:$0xff] }
  0xef   : > { %v991_v19 = vld [vmem:[#allocation2 + $0x148] sm:$0xff]  ;;  %v837_v23 = vadd.f32 %v703_v17, %v295_v15  ;;  %v853_v24 = vadd.f32 %v743_v18, %v311_v21  ;;  %1186 = vst.msk [vmem:[%s1774_s26 + $0xdc] sm:$0xf] %vm1130_vm4, %v1125_v51  ;;  %v1066_v63 = vmax.f32 %v1006_v57, 0.0  ;;  %v342_v18 = vld [vmem:[#allocation2 + $0x1d0] sm:$0xff] }
  0xf0   : > { %v1051_v9 = vmax.f32 %v991_v19, 0.0  ;;  %929 = vst.msk [vmem:[#allocation2 + $0x150] sm:$0xff] %vm223_vm3, %v868_v14  ;;  %v960_v32 = vld [vmem:[#allocation2 + $0x50] sm:$0xff]  ;;  %v329_v14 = vld [vmem:[#allocation2 + $0x168] sm:$0xff] }
  0xf1   : > { %898 = vst.msk [vmem:[#allocation2 + $0x58] sm:$0xff] %vm223_vm3, %v837_v23  ;;  %v1020_v36 = vmax.f32 %v960_v32, 0.0  ;;  %v976_v39 = vld [vmem:[#allocation2 + $0xd0] sm:$0xff]  ;;  %v1126_v4 = vpack.c.bf16 %v1066_v63, %v1066_v63 }
  0xf2   : > { %v1111_v16 = vpack.c.bf16 %v1051_v9, %v1051_v9  ;;  %914 = vst.msk [vmem:[#allocation2 + $0xd8] sm:$0xff] %vm223_vm3, %v853_v24  ;;  %v1036_v42 = vmax.f32 %v976_v39, 0.0  ;;  %v1007_v12 = vld [vmem:[#allocation2 + $0x1c8] sm:$0xff] }
  0xf3   : > { %v1080_v41 = vpack.c.bf16 %v1020_v36, %v1020_v36  ;;  %1187 = vst.msk [vmem:[%s1774_s26 + $0xe0] sm:$0xf] %vm1130_vm4, %v1126_v4  ;;  %v1067_v17 = vmax.f32 %v1007_v12, 0.0  ;;  %v315_v36 = vld [vmem:[#allocation2 + $0xf8] sm:$0xff] }
  0xf4   : > { %1172 = vst.msk [vmem:[%s1774_s26 + $0xa4] sm:$0xf] %vm1130_vm4, %v1111_v16  ;;  %v1096_v46 = vpack.c.bf16 %v1036_v42, %v1036_v42 }
  0xf5   : > { %v783_v30 = vpop.f32.mrf.mxu2  ;;  %1141 = vst.msk [vmem:[%s1774_s26 + $0x28] sm:$0xf] %vm1130_vm4, %v1080_v41  ;;  %v1127_v21 = vpack.c.bf16 %v1067_v17, %v1067_v17 }
  0xf6   : > { %v869_v33 = vadd.f32 %v783_v30, %v327_v25  ;;  %v706_v34 = vpop.f32.mrf.mxu0  ;;  %v746_v35 = vpop.f32.mrf.mxu1  ;;  %1157 = vst.msk [vmem:[%s1774_s26 + $0x68] sm:$0xf] %vm1130_vm4, %v1096_v46  ;;  %v884_v25 = vadd.f32 %v821_v55, %v342_v18 }
  0xf7   : > { %v838_v37 = vadd.f32 %v706_v34, %v296_v28  ;;  %v854_v38 = vadd.f32 %v746_v35, %v312_v29  ;;  %v992_v43 = vld [vmem:[#allocation2 + $0x150] sm:$0xff]  ;;  %1188 = vst.msk [vmem:[%s1774_s26 + $0xe4] sm:$0xf] %vm1130_vm4, %v1127_v21  ;;  %v343_v28 = vld [vmem:[#allocation2 + $0x1d8] sm:$0xff]  ;;  %v823_v29 = vpop.f32.mrf.mxu3 }
  0xf8   : > { %930 = vst.msk [vmem:[#allocation2 + $0x158] sm:$0xff] %vm223_vm3, %v869_v33  ;;  %v1052_v44 = vmax.f32 %v992_v43, 0.0  ;;  %v961_v50 = vld [vmem:[#allocation2 + $0x58] sm:$0xff]  ;;  %v330_v33 = vld [vmem:[#allocation2 + $0x170] sm:$0xff]  ;;  %v885_v34 = vadd.f32 %v823_v29, %v343_v28 }
  0xf9   : > { %899 = vst.msk [vmem:[#allocation2 + $0x60] sm:$0xff] %vm223_vm3, %v838_v37  ;;  %v1021_v52 = vmax.f32 %v961_v50, 0.0  ;;  %v977_v53 = vld [vmem:[#allocation2 + $0xd8] sm:$0xff] }
  0xfa   : > { %915 = vst.msk [vmem:[#allocation2 + $0xe0] sm:$0xff] %vm223_vm3, %v854_v38  ;;  %v1112_v49 = vpack.c.bf16 %v1052_v44, %v1052_v44  ;;  %v1037_v56 = vmax.f32 %v977_v53, 0.0  ;;  %v299_v35 = vld [vmem:[#allocation2 + $0x78] sm:$0xff] }
  0xfb   : > { %v1081_v61 = vpack.c.bf16 %v1021_v52, %v1021_v52  ;;  %945 = vst.msk [vmem:[#allocation2 + $0x1d0] sm:$0xff] %vm223_vm3, %v884_v25  ;;  %v331_v53 = vld [vmem:[#allocation2 + $0x178] sm:$0xff] }
  0xfc   : > { %1173 = vst.msk [vmem:[%s1774_s26 + $0xa8] sm:$0xf] %vm1130_vm4, %v1112_v49  ;;  %v1097_v0 = vpack.c.bf16 %v1037_v56, %v1037_v56 }
  0xfd   : > { %v786_v54 = vpop.f32.mrf.mxu2  ;;  %1142 = vst.msk [vmem:[%s1774_s26 + $0x2c] sm:$0xf] %vm1130_vm4, %v1081_v61 }
  0xfe   : > { %v870_v58 = vadd.f32 %v786_v54, %v328_v48  ;;  %v708_v59 = vpop.f32.mrf.mxu0  ;;  %v748_v60 = vpop.f32.mrf.mxu1  ;;  %1158 = vst.msk [vmem:[%s1774_s26 + $0x6c] sm:$0xf] %vm1130_vm4, %v1097_v0 }
  0xff   : > { %v993_v62 = vld [vmem:[#allocation2 + $0x158] sm:$0xff]  ;;  %v839_v13 = vadd.f32 %v708_v59, %v297_v3  ;;  %v855_v19 = vadd.f32 %v748_v60, %v313_v10  ;;  %946 = vst.msk [vmem:[#allocation2 + $0x1d8] sm:$0xff] %vm223_vm3, %v885_v34 }
 0x100   : > { %v1053_v1 = vmax.f32 %v993_v62, 0.0  ;;  %v962_v2 = vld [vmem:[#allocation2 + $0x60] sm:$0xff]  ;;  %931 = vst.msk [vmem:[#allocation2 + $0x160] sm:$0xff] %vm223_vm3, %v870_v58 }
 0x101   : > { %v1022_v5 = vmax.f32 %v962_v2, 0.0  ;;  %v978_v6 = vld [vmem:[#allocation2 + $0xe0] sm:$0xff]  ;;  %900 = vst.msk [vmem:[#allocation2 + $0x68] sm:$0xff] %vm223_vm3, %v839_v13 }
 0x102   : > { %v1113_v7 = vpack.c.bf16 %v1053_v1, %v1053_v1  ;;  %v1038_v8 = vmax.f32 %v978_v6, 0.0  ;;  %916 = vst.msk [vmem:[#allocation2 + $0xe8] sm:$0xff] %vm223_vm3, %v855_v19  ;;  %v1008_v50 = vld [vmem:[#allocation2 + $0x1d0] sm:$0xff] }
 0x103   : > { %v1082_v11 = vpack.c.bf16 %v1022_v5, %v1022_v5  ;;  %v1068_v52 = vmax.f32 %v1008_v50, 0.0 }
 0x104   : > { %1174 = vst.msk [vmem:[%s1774_s26 + $0xac] sm:$0xf] %vm1130_vm4, %v1113_v7  ;;  %v1098_v15 = vpack.c.bf16 %v1038_v8, %v1038_v8 }
 0x105   : > { %1143 = vst.msk [vmem:[%s1774_s26 + $0x30] sm:$0xf] %vm1130_vm4, %v1082_v11  ;;  %v788_v20 = vpop.f32.mrf.mxu2  ;;  %v1128_v56 = vpack.c.bf16 %v1068_v52, %v1068_v52 }
 0x106   : > { %1159 = vst.msk [vmem:[%s1774_s26 + $0x70] sm:$0xf] %vm1130_vm4, %v1098_v15  ;;  %v871_v9 = vadd.f32 %v788_v20, %v329_v14  ;;  %v711_v23 = vpop.f32.mrf.mxu0  ;;  %v751_v16 = vpop.f32.mrf.mxu1  ;;  %v1009_v61 = vld [vmem:[#allocation2 + $0x1d8] sm:$0xff] }
 0x107   : > { %v994_v24 = vld [vmem:[#allocation2 + $0x160] sm:$0xff]  ;;  %v840_v30 = vadd.f32 %v711_v23, %v298_v22  ;;  %v856_v32 = vadd.f32 %v751_v16, %v314_v26  ;;  %1189 = vst.msk [vmem:[%s1774_s26 + $0xe8] sm:$0xf] %vm1130_vm4, %v1128_v56  ;;  %v1069_v1 = vmax.f32 %v1009_v61, 0.0 }
 0x108   : > { %v1054_v27 = vmax.f32 %v994_v24, 0.0  ;;  %932 = vst.msk [vmem:[#allocation2 + $0x168] sm:$0xff] %vm223_vm3, %v871_v9  ;;  %v963_v38 = vld [vmem:[#allocation2 + $0x68] sm:$0xff] }
 0x109   : > { %901 = vst.msk [vmem:[#allocation2 + $0x70] sm:$0xff] %vm223_vm3, %v840_v30  ;;  %v1023_v42 = vmax.f32 %v963_v38, 0.0  ;;  %v979_v45 = vld [vmem:[#allocation2 + $0xe8] sm:$0xff]  ;;  %v1129_v5 = vpack.c.bf16 %v1069_v1, %v1069_v1 }
 0x10a   : > { %v1114_v31 = vpack.c.bf16 %v1054_v27, %v1054_v27  ;;  %917 = vst.msk [vmem:[#allocation2 + $0xf0] sm:$0xff] %vm223_vm3, %v856_v32  ;;  %v1039_v47 = vmax.f32 %v979_v45, 0.0 }
 0x10b   : > { %v1083_v46 = vpack.c.bf16 %v1023_v42, %v1023_v42  ;;  %1190 = vst.msk [vmem:[%s1774_s26 + $0xec] sm:$0xf] %vm1130_vm4, %v1129_v5 }
 0x10c   : > { %1175 = vst.msk [vmem:[%s1774_s26 + $0xb0] sm:$0xf] %vm1130_vm4, %v1114_v31  ;;  %v1099_v51 = vpack.c.bf16 %v1039_v47, %v1039_v47 }
 0x10d   : > { %v791_v37 = vpop.f32.mrf.mxu2  ;;  %1144 = vst.msk [vmem:[%s1774_s26 + $0x34] sm:$0xf] %vm1130_vm4, %v1083_v46 }
 0x10e   : > { %v872_v39 = vadd.f32 %v791_v37, %v330_v33  ;;  %v713_v40 = vpop.f32.mrf.mxu0  ;;  %v753_v41 = vpop.f32.mrf.mxu1  ;;  %1160 = vst.msk [vmem:[%s1774_s26 + $0x74] sm:$0xf] %vm1130_vm4, %v1099_v51 }
 0x10f   : > { %v841_v43 = vadd.f32 %v713_v40, %v299_v35  ;;  %v857_v44 = vadd.f32 %v753_v41, %v315_v36  ;;  %v995_v48 = vld [vmem:[#allocation2 + $0x168] sm:$0xff] }
 0x110   : > { %933 = vst.msk [vmem:[#allocation2 + $0x170] sm:$0xff] %vm223_vm3, %v872_v39  ;;  %v1055_v49 = vmax.f32 %v995_v48, 0.0  ;;  %v964_v55 = vld [vmem:[#allocation2 + $0x70] sm:$0xff] }
 0x111   : > { %902 = vst.msk [vmem:[#allocation2 + $0x78] sm:$0xff] %vm223_vm3, %v841_v43  ;;  %v1024_v57 = vmax.f32 %v964_v55, 0.0  ;;  %v980_v58 = vld [vmem:[#allocation2 + $0xf0] sm:$0xff] }
 0x112   : > { %918 = vst.msk [vmem:[#allocation2 + $0xf8] sm:$0xff] %vm223_vm3, %v857_v44  ;;  %v1115_v54 = vpack.c.bf16 %v1055_v49, %v1055_v49  ;;  %v1040_v60 = vmax.f32 %v980_v58, 0.0 }
 0x113   : > { %v1084_v63 = vpack.c.bf16 %v1024_v57, %v1024_v57 }
 0x114   : > { %1176 = vst.msk [vmem:[%s1774_s26 + $0xb4] sm:$0xf] %vm1130_vm4, %v1115_v54  ;;  %v1100_v2 = vpack.c.bf16 %v1040_v60, %v1040_v60 }
 0x115   : > { %v793_v59 = vpop.f32.mrf.mxu2  ;;  %1145 = vst.msk [vmem:[%s1774_s26 + $0x38] sm:$0xf] %vm1130_vm4, %v1084_v63 }
 0x116   : > { %v873_v62 = vadd.f32 %v793_v59, %v331_v53  ;;  %1161 = vst.msk [vmem:[%s1774_s26 + $0x78] sm:$0xf] %vm1130_vm4, %v1100_v2 }
 0x117   : > { %v996_v0 = vld [vmem:[#allocation2 + $0x170] sm:$0xff] }
 0x118   : > { %v1056_v3 = vmax.f32 %v996_v0, 0.0  ;;  %v965_v4 = vld [vmem:[#allocation2 + $0x78] sm:$0xff]  ;;  %934 = vst.msk [vmem:[#allocation2 + $0x178] sm:$0xff] %vm223_vm3, %v873_v62 }
 0x119   : > { %v1025_v6 = vmax.f32 %v965_v4, 0.0  ;;  %v981_v7 = vld [vmem:[#allocation2 + $0xf8] sm:$0xff] }
 0x11a   : > { %v1116_v8 = vpack.c.bf16 %v1056_v3, %v1056_v3  ;;  %v1041_v10 = vmax.f32 %v981_v7, 0.0 }
 0x11b   : > { %v1085_v11 = vpack.c.bf16 %v1025_v6, %v1025_v6 }
 0x11c   : > { %1177 = vst.msk [vmem:[%s1774_s26 + $0xb8] sm:$0xf] %vm1130_vm4, %v1116_v8  ;;  %v1101_v12 = vpack.c.bf16 %v1041_v10, %v1041_v10 }
 0x11d   : > { %1146 = vst.msk [vmem:[%s1774_s26 + $0x3c] sm:$0xf] %vm1130_vm4, %v1085_v11 }
 0x11e   : > { %1162 = vst.msk [vmem:[%s1774_s26 + $0x7c] sm:$0xf] %vm1130_vm4, %v1101_v12 }
 0x11f   : > { %v997_v13 = vld [vmem:[#allocation2 + $0x178] sm:$0xff] }
 0x120   : > { %v1057_v14 = vmax.f32 %v997_v13, 0.0 }
 0x122   : > { %v1117_v15 = vpack.c.bf16 %v1057_v14, %v1057_v14 }
 0x124   : > { %1178 = vst.msk [vmem:[%s1774_s26 + $0xbc] sm:$0xf] %vm1130_vm4, %v1117_v15 }
 0x125 PF: > { %s12_s11 = sadd.s32 1, %s1544_s11   ;;  %s1994_s9 = smov %s1540_s10 }
 0x126   : > { %p9_p5 = scmp.ge.s32.totalorder %s12_s11, 42   ;;  %s1995_s10 = smov %s1997_s12 }
 0x128   :  { %11 = sbr.rel (!%p9_p5) target bundleno = 2 (0x2), region = 69 }

</bundles_post_ra>
